<compile_context>
chip_gen: v5e
topology: v5e:2x2
jax: 0.10.0
libtpu: 0.0.40
codegen_flags: <defaults>
</compile_context>

<pallas_src>
import jax
import jax.numpy as jnp
from jax.experimental import pallas as pl
from jax.experimental.pallas import tpu as pltpu


def _lds_kernel(x_ref, u_ref, wa_ref, wb_ref, o_ref):
    """o = x @ WA + u @ WB   with WA = blkdiag_P((A+I).T), WB = blkdiag_P(B.T)."""
    acc = jnp.dot(x_ref[...], wa_ref[...], preferred_element_type=jnp.float32)
    acc = acc + jnp.dot(u_ref[...], wb_ref[...], preferred_element_type=jnp.float32)
    o_ref[...] = acc.astype(o_ref.dtype)


def _round_up(v, m):
    return -(-v // m) * m


def _choose_tile(rows, max_rows=1024):
    """Packed-row tile size: one fat tile if it fits, else an even # of steps."""
    if rows < 8:
        return rows                      # full-array block (< one sublane tile)
    if rows <= max_rows:
        return _round_up(rows, 8)        # single fat tile
    steps = pl.cdiv(rows, max_rows)
    steps += steps % 2                   # even #steps -> balanced v7x megacore split
    return _round_up(pl.cdiv(rows, steps), 8)


def lds_predict(x, u, A, B):
    """x:[batch,xdim], u:[batch,udim], A:[xdim,xdim], B:[xdim,udim] (nn.Linear weights)."""
    batch, xdim = x.shape
    udim = u.shape[1]

    # Compute dtype follows the activations (no forced f32 upcast).
    cdtype = jnp.result_type(x.dtype, u.dtype)

    # Lane-packing factor for a lane-dense output (vst instead of vst.msk).
    if xdim < 128 and 128 % xdim == 0 and batch % (128 // xdim) == 0:
        pack = 128 // xdim
    else:
        pack = 1

    rows = batch // pack
    xw = pack * xdim                     # packed feature widths
    uw = pack * udim

    # Static fused weights (one-time setup): residual folded in, transposed,
    # and made block-diagonal for the packed layout.
    wa = (A.astype(jnp.float32) + jnp.eye(xdim, dtype=jnp.float32)).T   # [xdim, xdim]
    wb = B.astype(jnp.float32).T                                        # [udim, xdim]
    if pack > 1:
        eye_p = jnp.eye(pack, dtype=jnp.float32)
        wa = jnp.kron(eye_p, wa)                                        # [xw, xw]
        wb = jnp.kron(eye_p, wb)                                        # [uw, xw]
    wa = wa.astype(cdtype)
    wb = wb.astype(cdtype)

    # Free row-major reinterpretations (no data movement in HBM).
    x_p = x.astype(cdtype).reshape(rows, xw)
    u_p = u.astype(cdtype).reshape(rows, uw)

    tbp = _choose_tile(rows)
    grid = (pl.cdiv(rows, tbp),)

    # VMEM: actual usage (double-buffered tiles + weights) + modest headroom.
    elt = jnp.dtype(cdtype).itemsize
    tile_bytes = tbp * (xw + uw + xw) * elt          # x-in, u-in, out tiles
    weight_bytes = (xw * xw + uw * xw) * elt
    vmem_limit = int(2 * (tile_bytes + weight_bytes) + 8 * 1024 * 1024)

    cost = pl.CostEstimate(
        flops=2 * rows * (xw + uw) * xw,             # actual MXU work
        transcendentals=0,
        bytes_accessed=elt * (batch * (xdim + udim)  # activations in
                              + batch * xdim         # out
                              + xw * xw + uw * xw),  # resident weights
    )

    out = pl.pallas_call(
        _lds_kernel,
        out_shape=jax.ShapeDtypeStruct((rows, xw), cdtype),
        grid=grid,
        in_specs=[
            pl.BlockSpec((tbp, xw), lambda i: (i, 0)),   # x tiles (pipelined)
            pl.BlockSpec((tbp, uw), lambda i: (i, 0)),   # u tiles (pipelined)
            pl.BlockSpec((xw, xw), lambda i: (0, 0)),    # WA: VMEM-resident
            pl.BlockSpec((uw, xw), lambda i: (0, 0)),    # WB: VMEM-resident
        ],
        out_specs=pl.BlockSpec((tbp, xw), lambda i: (i, 0)),
        compiler_params=pltpu.CompilerParams(
            dimension_semantics=("parallel",),           # megacore on v7x
            vmem_limit_bytes=vmem_limit,
        ),
        cost_estimate=cost,
    )(x_p, u_p, wa, wb)

    return out.reshape(batch, xdim)                      # free reinterpretation


if __name__ == "__main__":
    key = jax.random.PRNGKey(0)
    kx, ku, ka, kb = jax.random.split(key, 4)

    xdim, udim = 32, 8
    # nn.Linear(xdim -> xdim, bias=False).weight -> [xdim, xdim]
    A = jax.random.normal(ka, (xdim, xdim), dtype=jnp.float32) * 0.1
    # nn.Linear(udim -> xdim, bias=False).weight -> [xdim, udim]
    B = jax.random.normal(kb, (xdim, udim), dtype=jnp.float32) * 0.1

    def reference(x, u):
        return x + x @ A.T + u @ B.T

    # batch=8    : small module-consistent shape, packed lane-dense path (P=4)
    # batch=10   : not divisible by 4 -> fallback P=1 path
    # batch=1040 : single fat packed tile with masked partial block
    # batch=4120 : two grid steps (even split) + masked partial last block
    for batch in (8, 10, 1040, 4120):
        x = jax.random.normal(kx, (batch, xdim), dtype=jnp.float32)
        u = jax.random.normal(ku, (batch, udim), dtype=jnp.float32)
        out = jax.block_until_ready(lds_predict(x, u, A, B))
        ref = reference(x, u)
        assert out.shape == (batch, xdim)
        assert jnp.allclose(out, ref, atol=1e-5, rtol=1e-5), f"mismatch at batch={batch}"

    print("KERNEL_OK")
</pallas_src>

<mosaic_0001>
module attributes {stable_mosaic.version = 11 : i64} {
  func.func @_lds_kernel(%arg0: i32, %arg1: memref<2x128xf32, #tpu.memory_space<vmem>>, %arg2: memref<2x32xf32, #tpu.memory_space<vmem>>, %arg3: memref<128x128xf32, #tpu.memory_space<vmem>>, %arg4: memref<32x128xf32, #tpu.memory_space<vmem>>, %arg5: memref<2x128xf32, #tpu.memory_space<vmem>>) attributes {dimension_semantics = [#tpu.dimension_semantics<parallel>], iteration_bounds = array<i64: 1>, scalar_prefetch = 0 : i64, scratch_operands = 0 : i64, tpu.core_type = #tpu.core_type<tc>, window_params = [{transform_indices = @transform_0, window_bounds = array<i64: 2, 128>}, {transform_indices = @transform_1, window_bounds = array<i64: 2, 32>}, {pipeline_mode = #tpu.pipeline_mode<synchronous>, transform_indices = @transform_2, window_bounds = array<i64: 128, 128>}, {pipeline_mode = #tpu.pipeline_mode<synchronous>, transform_indices = @transform_3, window_bounds = array<i64: 32, 128>}, {transform_indices = @transform_4, window_bounds = array<i64: 2, 128>}]} {
    %c0 = arith.constant 0 : index
    %c0_0 = arith.constant 0 : index
    %0 = vector.load %arg1[%c0, %c0_0] : memref<2x128xf32, #tpu.memory_space<vmem>>, vector<2x128xf32>
    %c0_1 = arith.constant 0 : index
    %c0_2 = arith.constant 0 : index
    %1 = vector.load %arg3[%c0_1, %c0_2] : memref<128x128xf32, #tpu.memory_space<vmem>>, vector<128x128xf32>
    %cst = arith.constant dense<0.000000e+00> : vector<2x128xf32>
    %2 = tpu.matmul %0, %1, %cst {dimension_numbers = #tpu.dot_dimension_numbers<[1], [0], [0], [1], [0, 0, 1, 1], [], []>} : vector<2x128xf32>, vector<128x128xf32>, vector<2x128xf32> -> vector<2x128xf32>
    %c0_3 = arith.constant 0 : index
    %c0_4 = arith.constant 0 : index
    %3 = vector.load %arg2[%c0_3, %c0_4] : memref<2x32xf32, #tpu.memory_space<vmem>>, vector<2x32xf32>
    %c0_5 = arith.constant 0 : index
    %c0_6 = arith.constant 0 : index
    %4 = vector.load %arg4[%c0_5, %c0_6] : memref<32x128xf32, #tpu.memory_space<vmem>>, vector<32x128xf32>
    %cst_7 = arith.constant dense<0.000000e+00> : vector<2x128xf32>
    %5 = tpu.matmul %3, %4, %cst_7 {dimension_numbers = #tpu.dot_dimension_numbers<[1], [0], [0], [1], [0, 0, 1, 1], [], []>} : vector<2x32xf32>, vector<32x128xf32>, vector<2x128xf32> -> vector<2x128xf32>
    %6 = arith.addf %2, %5 : vector<2x128xf32>
    %c0_8 = arith.constant 0 : index
    %c0_9 = arith.constant 0 : index
    %7 = vector.load %arg5[%c0_8, %c0_9] : memref<2x128xf32, #tpu.memory_space<vmem>>, vector<2x128xf32>
    tpu.vector_store %arg5[%c0_8, %c0_9], %6 {strides = array<i32>} : memref<2x128xf32, #tpu.memory_space<vmem>>, vector<2x128xf32>,
    return
  }
  func.func @transform_0(%arg0: i32) -> (i32, i32) {
    %c0_i32 = arith.constant 0 : i32
    %c0_i32_0 = arith.constant 0 : i32
    return %arg0, %c0_i32 : i32, i32
  }
  func.func @transform_1(%arg0: i32) -> (i32, i32) {
    %c0_i32 = arith.constant 0 : i32
    %c0_i32_0 = arith.constant 0 : i32
    return %arg0, %c0_i32 : i32, i32
  }
  func.func @transform_2(%arg0: i32) -> (i32, i32) {
    %c0_i32 = arith.constant 0 : i32
    %c0_i32_0 = arith.constant 0 : i32
    %c0_i32_1 = arith.constant 0 : i32
    return %c0_i32, %c0_i32_0 : i32, i32
  }
  func.func @transform_3(%arg0: i32) -> (i32, i32) {
    %c0_i32 = arith.constant 0 : i32
    %c0_i32_0 = arith.constant 0 : i32
    %c0_i32_1 = arith.constant 0 : i32
    return %c0_i32, %c0_i32_0 : i32, i32
  }
  func.func @transform_4(%arg0: i32) -> (i32, i32) {
    %c0_i32 = arith.constant 0 : i32
    %c0_i32_0 = arith.constant 0 : i32
    return %arg0, %c0_i32 : i32, i32
  }
}

</mosaic_0001>

<bundles_post_ra>
// kernel: tpu_custom_call.1
= control target key start
LH: loop header
LB: loop body
LE: loop exit
PB: predicated region body
PF: predicated region fallthrough
CT: control target
= control target key end

     0   :  { %9 = vsyncpa [#allocation3], 0  ;;  %s346_s0 = inlined_call_operand.hbm [shape: f32[2,128], index: 0, kind: input, shape index: {}]   ;;  %s347_s1 = inlined_call_operand.hbm [shape: f32[2,32], index: 1, kind: input, shape index: {}]   ;;  %s348_s2 = inlined_call_operand.hbm [shape: f32[128,128], index: 2, kind: input, shape index: {}]   ;;  %s349_s3 = inlined_call_operand.hbm [shape: f32[32,128], index: 3, kind: input, shape index: {}]   ;;  %s350_s4 = inlined_call_operand.hbm [shape: f32[2,128], index: 4, kind: output, shape index: {}]  }
   0x1   :  { %10 = vsyncpa [#allocation6], 0 }
   0x2   :  { %11 = vsyncpa [#allocation9], 0  ;;  %s29_s17 = sshll.u32 %s347_s1, 4  ;;  %s30_s17 = int_to_ptr.hbm [resolvable:$true] %s29_s17 }
   0x3   :  { %12 = vsyncpa [#allocation4], 0  ;;  %s299_s18 = smov [#allocation5]   ;;  %s18_s22 = sshll.u32 %s346_s0, 4  ;;  %s19_s22 = int_to_ptr.hbm [resolvable:$true] %s18_s22 }
   0x4   :  { %s31_s19 = sshll.u32 %s299_s18, 4  ;;  %s300_s23 = smov [#allocation2]   ;;  %s32_s19 = int_to_ptr.vmem [resolvable:$true] %s31_s19 }
   0x5   :  { %34 = dma.hbm_to_vmem [thread:$0]  %s30_s17, 32, %s32_s19, [#allocation6]  }
   0x6   :  { %s20_s24 = sshll.u32 %s300_s23, 4  ;;  %s39_s27 = sshll.u32 %s348_s2, 4  ;;  %s21_s24 = int_to_ptr.vmem [resolvable:$true] %s20_s24  ;;  %s40_s27 = int_to_ptr.hbm [resolvable:$true] %s39_s27 }
   0x7   :  { %23 = dma.hbm_to_vmem [thread:$0]  %s19_s22, 32, %s21_s24, [#allocation3]  }
   0x8   :  { %s301_s1 = smov [#allocation7]   ;;  %s52_s5 = sshll.u32 %s349_s3, 4  ;;  %s53_s5 = int_to_ptr.hbm [resolvable:$true] %s52_s5 }
   0x9   :  { %s41_s28 = sshll.u32 %s301_s1, 4  ;;  %s302_s6 = smov 128   ;;  %s42_s28 = int_to_ptr.vmem [resolvable:$true] %s41_s28 }
   0xa   :  { %s303_s0 = smov 8   ;;  %s304_s7 = smov [#allocation8]  }
   0xb   :  { %47 = dma.hbm_to_vmem [thread:$0]  %s40_s27, 2048, %s42_s28, [#allocation6], %s302_s6, %s302_s6, %s303_s0  }
   0xc   :  { %s54_s8 = sshll.u32 %s304_s7, 4  ;;  %s55_s8 = int_to_ptr.vmem [resolvable:$true] %s54_s8 }
   0xd   :  { %60 = dma.hbm_to_vmem [thread:$0]  %s53_s5, 512, %s55_s8, [#allocation9], %s302_s6, %s302_s6, %s303_s0  }
   0xe   :  { %291 = dma.done.wait [#allocation3], 32  }
   0xf   :  { %292 = vsyncadd [#allocation3], 4294967264 }
  0x10   :  { %293 = dma.done.wait [#allocation6], 2080  }
  0x11   :  { %294 = vsyncadd [#allocation6], 4294965216 }
  0x12   :  { %295 = dma.done.wait [#allocation9], 512  }
  0x13   :  { %296 = vsyncadd [#allocation9], 4294966784  ;;  %v93_v0 = vld [vmem:[#allocation7 + $0x78] sm:$0xff]  ;;  %v92_v1 = vld [vmem:[#allocation7 + $0x70] sm:$0xff]  ;;  %vm99_vm0 = vcmask 261120   ;;  %s305_s2 = smov [#allocation10]  }
  0x14   :  { %123 = vmatpush.msra.mxu1 %v93_v0  ;;  %v91_v2 = vld [vmem:[#allocation7 + $0x68] sm:$0xff]  ;;  %v90_v3 = vld [vmem:[#allocation7 + $0x60] sm:$0xff]  ;;  %v98_v4 = vld [vmem:[#allocation8 + $0x18] sm:$0xff]  ;;  %s149_s3 = sshll.u32 %s305_s2, 4  ;;  %s151_s11 = sshll.u32 %s350_s4, 4  ;;  %s150_s3 = int_to_ptr.vmem [resolvable:$true] %s149_s3  ;;  %s152_s11 = int_to_ptr.hbm [resolvable:$true] %s151_s11 }
  0x15   :  { %v97_v5 = vld [vmem:[#allocation8 + $0x10] sm:$0xff]  ;;  %115 = vmatpush.msra.mxu0 %v98_v4  ;;  %v89_v6 = vld [vmem:[#allocation7 + $0x58] sm:$0xff]  ;;  %v96_v7 = vld [vmem:[#allocation8 + $0x8] sm:$0xff] }
  0x16   :  { %124 = vmatpush.msra.mxu1 %v92_v1  ;;  %v88_v8 = vld [vmem:[#allocation7 + $0x50] sm:$0xff]  ;;  %v95_v9 = vld [vmem:[#allocation8] sm:$0xff]  ;;  %v94_v10 = vld [vmem:[#allocation5] sm:$0x3] }
  0x17   :  { %116 = vmatpush.msra.mxu0 %v97_v5  ;;  %v87_v11 = vld [vmem:[#allocation7 + $0x48] sm:$0xff]  ;;  %v86_v12 = vld [vmem:[#allocation7 + $0x40] sm:$0xff]  ;;  %v85_v13 = vld [vmem:[#allocation7 + $0x38] sm:$0xff] }
  0x18   :  { %125 = vmatpush.msra.mxu1 %v91_v2  ;;  %v84_v14 = vld [vmem:[#allocation7 + $0x30] sm:$0xff]  ;;  %v83_v15 = vld [vmem:[#allocation7 + $0x28] sm:$0xff]  ;;  %v82_v16 = vld [vmem:[#allocation7 + $0x20] sm:$0xff] }
  0x19   :  { %117 = vmatpush.msra.mxu0 %v96_v7  ;;  %v81_v17 = vld [vmem:[#allocation7 + $0x18] sm:$0xff]  ;;  %v80_v18 = vld [vmem:[#allocation7 + $0x10] sm:$0xff]  ;;  %v79_v19 = vld [vmem:[#allocation7 + $0x8] sm:$0xff] }
  0x1a   :  { %126 = vmatpush.msra.mxu1 %v90_v3  ;;  %v78_v20 = vld [vmem:[#allocation7] sm:$0xff]  ;;  %v77_v21 = vld [vmem:[#allocation2] sm:$0x3] }
  0x1b   :  { %118 = vmatpush.msra.mxu0 %v95_v9 }
  0x1c   :  { %127 = vmatpush.msra.mxu1 %v89_v6  ;;  %163 = vmatmul.msk.f32.vlgmr.msra.gmra.mxu0 %vm99_vm0, %v94_v10 }
  0x1e   :  { %128 = vmatpush.msra.mxu1 %v88_v8 }
  0x20   :  { %129 = vmatpush.msra.mxu1 %v87_v11 }
  0x22   :  { %130 = vmatpush.msra.mxu1 %v86_v12 }
  0x24   :  { %131 = vmatpush.msra.mxu1 %v85_v13 }
  0x26   :  { %132 = vmatpush.msra.mxu1 %v84_v14 }
  0x28   :  { %133 = vmatpush.msra.mxu1 %v83_v15 }
  0x2a   :  { %134 = vmatpush.msra.mxu1 %v82_v16 }
  0x2c   :  { %135 = vmatpush.msra.mxu1 %v81_v17 }
  0x2e   :  { %136 = vmatpush.msra.mxu1 %v80_v18 }
  0x30   :  { %137 = vmatpush.msra.mxu1 %v79_v19 }
  0x32   :  { %138 = vmatpush.msra.mxu1 %v78_v20 }
  0x33   :  { %139 = vmatmul.f32.vlgmr.msra.gmra.mxu1 %v77_v21 }
  0x99   :  { %v120_v22 = vpop.f32.mrf.mxu0 }
  0xb0   :  { %v140_v23 = vpop.f32.mrf.mxu1 }
  0xb1   :  { %v141_v24 = vadd.f32 %v140_v23, %v120_v22 }
  0xb3   :  { %143 = vst [vmem:[#allocation10] sm:$0x3] %v141_v24 }
  0xb4   :  { %154 = dma.vmem_to_hbm [thread:$0]  %s150_s3, 32, %s152_s11, [#allocation4]  }
  0xb5   :  { %297 = dma.done.wait [#allocation4], 32  }
  0xb6   :  { %298 = vsyncadd [#allocation4], 4294967264 }
  0xb7   :  { %159 = vsyncpa [#allocation3], 1 }
  0xb8   :  { %160 = vsyncpa [#allocation6], 1 }
  0xb9   :  { %161 = vsyncpa [#allocation9], 1 }
  0xba   :  { %162 = vsyncpa [#allocation4], 1 }

</bundles_post_ra>
